<compile_context>
chip_gen: v6e
topology: v6e:2x2x1
jax: 0.10.0
libtpu: 0.0.40
codegen_flags: <defaults>
</compile_context>

<pallas_src>
import functools

import jax
import jax.numpy as jnp
from jax.experimental import pallas as pl
from jax.experimental.pallas import tpu as pltpu

_EPS = 1e-6  # epsilon of featureL2Norm in the PyTorch module


def _feature_correlation_3d_kernel(a_ref, b_ref, o_ref, *, eps):
    # a_ref: (1, C, H, W)   feature_A tile for this batch element
    # b_ref: (1, C, H*W)    feature_B tile, spatial pre-flattened: m = hB*W + wB
    # o_ref: (1, H*W, H*W)  correlation: rows k = wA*H + hA, cols m = hB*W + wB
    a = a_ref[0]                      # (C, H, W)
    bm = b_ref[0]                     # (C, HW)
    ch, hh, ww = a.shape

    # featureL2Norm over channels (NCHW dim 1 == axis 0 here).
    a_n = a / jnp.sqrt(jnp.sum(a * a, axis=0, keepdims=True) + eps)
    b_n = bm / jnp.sqrt(jnp.sum(bm * bm, axis=0, keepdims=True) + eps)

    # A.transpose(2, 3).view(b, c, h*w): flatten A's spatial dims with hA fastest,
    # i.e. column index k = wA*H + hA.  Done in-kernel on the tiny (C, H, W) tile.
    a_k = jnp.transpose(a_n, (0, 2, 1)).reshape(ch, hh * ww)

    # bmm(fB, fA): corr[k, m] = sum_c A_n[c, hA, wA] * B_n[c, hB, wB]   (MXU matmul)
    corr = jnp.einsum("ck,cm->km", a_k, b_n, preferred_element_type=jnp.float32)

    # ReLU, then featureL2Norm over dim 1 of the (b, h*w, h, w) output == the k axis.
    r = jnp.maximum(corr, 0.0)
    r = r / jnp.sqrt(jnp.sum(r * r, axis=0, keepdims=True) + eps)
    o_ref[0] = r.astype(o_ref.dtype)


@functools.partial(jax.jit, static_argnames=("shape",))
def feature_correlation(feature_A, feature_B, shape="3D"):
    # TODO(synk): shape='4D' branch ((b, 1, h, w, h, w) output) is not implemented.
    if shape != "3D":
        raise NotImplementedError("only shape='3D' is implemented")
    assert feature_A.shape == feature_B.shape
    b, c, h, w = feature_A.shape
    hw = h * w

    fa = feature_A.astype(jnp.float32)                     # (B, C, H, W)
    fb = feature_B.astype(jnp.float32).reshape(b, c, hw)   # contiguous reshape: free

    out = pl.pallas_call(
        functools.partial(_feature_correlation_3d_kernel, eps=_EPS),
        out_shape=jax.ShapeDtypeStruct((b, hw, hw), jnp.float32),
        grid=(b,),
        in_specs=[
            pl.BlockSpec((1, c, h, w), lambda i: (i, 0, 0, 0)),
            pl.BlockSpec((1, c, hw), lambda i: (i, 0, 0)),
        ],
        out_specs=pl.BlockSpec((1, hw, hw), lambda i: (i, 0, 0)),
        compiler_params=pltpu.CompilerParams(dimension_semantics=("parallel",)),
    )(fa, fb)

    # (b, h*w, h*w) -> (b, h*w, h, w): contiguous split of the last dim, free.
    return out.reshape(b, hw, h, w)


# ------------------------ pure-JAX reference (for sanity check) ------------------------
def _feature_correlation_ref(feature_A, feature_B, eps=_EPS):
    def l2norm(f):
        return f / jnp.sqrt(jnp.sum(f * f, axis=1, keepdims=True) + eps)

    A = l2norm(feature_A.astype(jnp.float32))
    B = l2norm(feature_B.astype(jnp.float32))
    b, c, h, w = A.shape
    fA = jnp.swapaxes(A, 2, 3).reshape(b, c, h * w)
    fB = jnp.swapaxes(B.reshape(b, c, h * w), 1, 2)
    mul = jnp.matmul(fB, fA)                                   # (b, h*w, h*w)
    ct = jnp.swapaxes(jnp.swapaxes(mul.reshape(b, h, w, h * w), 2, 3), 1, 2)
    ct = jnp.maximum(ct, 0.0)
    return l2norm(ct)                                          # (b, h*w, h, w)


if __name__ == "__main__":
    key = jax.random.PRNGKey(0)
    ka, kb = jax.random.split(key)

    batch, chan, height, width = 2, 32, 8, 8
    feature_A = jax.random.normal(ka, (batch, chan, height, width), jnp.float32)
    feature_B = jax.random.normal(kb, (batch, chan, height, width), jnp.float32)

    out = feature_correlation(feature_A, feature_B)
    out = jax.block_until_ready(out)

    assert out.shape == (batch, height * width, height, width), out.shape
    assert bool(jnp.all(jnp.isfinite(out)))

    ref = _feature_correlation_ref(feature_A, feature_B)
    max_err = float(jnp.max(jnp.abs(out - ref)))
    assert max_err < 2e-2, f"mismatch vs reference: {max_err}"

    print("KERNEL_OK")
</pallas_src>

<mosaic_0001>
module attributes {stable_mosaic.version = 11 : i64} {
  func.func @_feature_correlation_3d_kernel(%arg0: i32, %arg1: memref<1x32x8x8xf32, #tpu.memory_space<vmem>>, %arg2: memref<1x32x64xf32, #tpu.memory_space<vmem>>, %arg3: memref<1x64x64xf32, #tpu.memory_space<vmem>>) attributes {dimension_semantics = [#tpu.dimension_semantics<parallel>], iteration_bounds = array<i64: 2>, scalar_prefetch = 0 : i64, scratch_operands = 0 : i64, tpu.core_type = #tpu.core_type<tc>, window_params = [{transform_indices = @transform_0, window_bounds = array<i64: 1, 32, 8, 8>}, {transform_indices = @transform_1, window_bounds = array<i64: 1, 32, 64>}, {transform_indices = @transform_2, window_bounds = array<i64: 1, 64, 64>}]} {
    %c0 = arith.constant 0 : index
    %c0_0 = arith.constant 0 : index
    %c0_1 = arith.constant 0 : index
    %c0_2 = arith.constant 0 : index
    %0 = vector.load %arg1[%c0, %c0_0, %c0_1, %c0_2] : memref<1x32x8x8xf32, #tpu.memory_space<vmem>>, vector<1x32x8x8xf32>
    %1 = vector.shape_cast %0 : vector<1x32x8x8xf32> to vector<32x8x8xf32>
    %c0_3 = arith.constant 0 : index
    %c0_4 = arith.constant 0 : index
    %c0_5 = arith.constant 0 : index
    %2 = vector.load %arg2[%c0_3, %c0_4, %c0_5] : memref<1x32x64xf32, #tpu.memory_space<vmem>>, vector<1x32x64xf32>
    %3 = vector.shape_cast %2 : vector<1x32x64xf32> to vector<32x64xf32>
    %4 = arith.mulf %1, %1 : vector<32x8x8xf32>
    %cst = arith.constant dense<0.000000e+00> : vector<8x8xf32>
    %5 = vector.multi_reduction <add>, %4, %cst [0] : vector<32x8x8xf32> to vector<8x8xf32>
    %6 = vector.shape_cast %5 : vector<8x8xf32> to vector<1x8x8xf32>
    %cst_6 = arith.constant 9.99999997E-7 : f32
    %7 = vector.broadcast %cst_6 : f32 to vector<1x8x8xf32>
    %8 = arith.addf %6, %7 : vector<1x8x8xf32>
    %9 = math.sqrt %8 : vector<1x8x8xf32>
    %10 = vector.broadcast %9 : vector<1x8x8xf32> to vector<32x8x8xf32>
    %11 = arith.divf %1, %10 : vector<32x8x8xf32>
    %12 = arith.mulf %3, %3 : vector<32x64xf32>
    %cst_7 = arith.constant dense<0.000000e+00> : vector<64xf32>
    %13 = vector.multi_reduction <add>, %12, %cst_7 [0] : vector<32x64xf32> to vector<64xf32>
    %14 = vector.shape_cast %13 : vector<64xf32> to vector<1x64xf32>
    %cst_8 = arith.constant 9.99999997E-7 : f32
    %15 = vector.broadcast %cst_8 : f32 to vector<1x64xf32>
    %16 = arith.addf %14, %15 : vector<1x64xf32>
    %17 = math.sqrt %16 : vector<1x64xf32>
    %18 = vector.broadcast %17 : vector<1x64xf32> to vector<32x64xf32>
    %19 = arith.divf %3, %18 : vector<32x64xf32>
    %20 = tpu.transpose %11, [0, 2, 1] : vector<32x8x8xf32> -> vector<32x8x8xf32>
    %21 = vector.shape_cast %20 : vector<32x8x8xf32> to vector<32x64xf32>
    "tpu.trace_start"() <{level = 10 : i32, message = "ck,cm->km"}> : () -> ()
    %cst_9 = arith.constant dense<0.000000e+00> : vector<64x64xf32>
    %22 = tpu.matmul %21, %19, %cst_9 {dimension_numbers = #tpu.dot_dimension_numbers<[0], [0], [1], [1], [0, 1, 1, 1], [], []>} : vector<32x64xf32>, vector<32x64xf32>, vector<64x64xf32> -> vector<64x64xf32>
    "tpu.trace_stop"() : () -> ()
    %cst_10 = arith.constant 0.000000e+00 : f32
    %23 = vector.broadcast %cst_10 : f32 to vector<64x64xf32>
    %24 = arith.maximumf %22, %23 : vector<64x64xf32>
    %25 = arith.mulf %24, %24 : vector<64x64xf32>
    %cst_11 = arith.constant dense<0.000000e+00> : vector<64xf32>
    %26 = vector.multi_reduction <add>, %25, %cst_11 [0] : vector<64x64xf32> to vector<64xf32>
    %27 = vector.shape_cast %26 : vector<64xf32> to vector<1x64xf32>
    %cst_12 = arith.constant 9.99999997E-7 : f32
    %28 = vector.broadcast %cst_12 : f32 to vector<1x64xf32>
    %29 = arith.addf %27, %28 : vector<1x64xf32>
    %30 = math.sqrt %29 : vector<1x64xf32>
    %31 = vector.broadcast %30 : vector<1x64xf32> to vector<64x64xf32>
    %32 = arith.divf %24, %31 : vector<64x64xf32>
    %c0_13 = arith.constant 0 : index
    %c0_14 = arith.constant 0 : index
    %c0_15 = arith.constant 0 : index
    %33 = vector.load %arg3[%c0_13, %c0_14, %c0_15] : memref<1x64x64xf32, #tpu.memory_space<vmem>>, vector<1x64x64xf32>
    %34 = vector.shape_cast %33 : vector<1x64x64xf32> to vector<64x64xf32>
    %35 = vector.shape_cast %32 : vector<64x64xf32> to vector<1x64x64xf32>
    tpu.vector_store %arg3[%c0_13, %c0_14, %c0_15], %35 {strides = array<i32>} : memref<1x64x64xf32, #tpu.memory_space<vmem>>, vector<1x64x64xf32>,
    return
  }
  func.func @transform_0(%arg0: i32) -> (i32, i32, i32, i32) {
    %c0_i32 = arith.constant 0 : i32
    %c0_i32_0 = arith.constant 0 : i32
    %c0_i32_1 = arith.constant 0 : i32
    %c0_i32_2 = arith.constant 0 : i32
    return %arg0, %c0_i32, %c0_i32_0, %c0_i32_1 : i32, i32, i32, i32
  }
  func.func @transform_1(%arg0: i32) -> (i32, i32, i32) {
    %c0_i32 = arith.constant 0 : i32
    %c0_i32_0 = arith.constant 0 : i32
    %c0_i32_1 = arith.constant 0 : i32
    return %arg0, %c0_i32, %c0_i32_0 : i32, i32, i32
  }
  func.func @transform_2(%arg0: i32) -> (i32, i32, i32) {
    %c0_i32 = arith.constant 0 : i32
    %c0_i32_0 = arith.constant 0 : i32
    %c0_i32_1 = arith.constant 0 : i32
    return %arg0, %c0_i32, %c0_i32_0 : i32, i32, i32
  }
}

</mosaic_0001>

<bundles_post_ra>
// kernel: feature_correlation.1
= control target key start
LH: loop header
LB: loop body
LE: loop exit
PB: predicated region body
PF: predicated region fallthrough
CT: control target
= control target key end

     0   :  { %s2498_s9 = smov 0   ;;  %s3059_s0 = inlined_call_operand.vmem [shape: f32[2,32,8,8], index: 0, kind: input, shape index: {}]   ;;  %s3060_s1 = inlined_call_operand.vmem [shape: f32[2,32,64], index: 1, kind: input, shape index: {}]   ;;  %s3061_s2 = inlined_call_operand.vmem [shape: f32[2,64,64], index: 2, kind: output, shape index: {}]  }
   0x1 LB: > { %s2372_s10 = sadd.s32 4294967295, %s2472_s9   ;;  %p2376_p0 = scmp.ge.s32.totalorder %s2472_s9, 1  ;;  %s2472_s9 = sphi %s2498_s9, %s12_s9  }
   0x2   : > { %p122_p1 = scmp.lt.s32.totalorder %s2472_s9, 3 }
   0x4   : > { %p123_p2 = pnand %p2376_p0, %p122_p1 }
   0x5   : > { %p149_p3 = scmp.lt.s32.totalorder (!%p123_p2), %s2372_s10, 1  ;;  %s2476_s15 = smov (!%p123_p2), 16  }
   0x6   : > { %126 = sbr.rel (%p123_p2) target bundleno = 853 (0x355), region = 28  ;;  %s2477_s16 = smov (!%p123_p2), 8  }
   0x7   : > { %s2478_s17 = smov (!%p123_p2), 32   ;;  %s2479_s18 = smov (!%p123_p2), 24  }
   0x8   : > { %s2480_s19 = smov (!%p123_p2), 48   ;;  %s2481_s20 = smov (!%p123_p2), 40  }
   0x9   : > { %s2482_s21 = smov (!%p123_p2), 56  }
   0xb   : > { %s3063_s10 = smov (!%p149_p3, %s2372_s10), 1  ;;  %vm232_vm0 = vcmask 64512   ;;  %vm341_vm3 = vcmask 523264   ;;  %vm2052_vm6 = vcmask 130048   ;;  %vm2057_vm7 = vcmask 195584  }
   0xc   : > { %s2393_s11 = sshll.u32 %s3063_s10, 8  ;;  %s2394_s22 = sshll.u32 %s3063_s10, 5  ;;  %vm2062_vm8 = vcmask 261120   ;;  %vm2067_vm9 = vcmask 326656   ;;  %vm2072_vm10 = vcmask 392192   ;;  %vm2077_vm11 = vcmask 457728  }
   0xd   : > { %s2512_s14 = scalar_lea.vmem %s3059_s0, %s2393_s11  ;;  %s158_s25 = scalar_lea.vmem %s3060_s1, %s2394_s22 }
   0xe   : > { %v2515_v0 = vld [vmem:[%s2512_s14] sm:$0xff]  ;;  %v2518_v1 = vld [vmem:[%s2512_s14 + $0x8] sm:$0xff]  ;;  %v2521_v2 = vld [vmem:[%s2512_s14 + $0x10] sm:$0xff]  ;;  %s2395_s26 = sshll.u32 %s3063_s10, 6 }
   0xf   : > { %v2524_v3 = vld [vmem:[%s2512_s14 + $0x18] sm:$0xff]  ;;  %v200_v4 = vmul.f32 %v2515_v0, %v2515_v0  ;;  %v201_v5 = vmul.f32 %v2518_v1, %v2518_v1  ;;  %v202_v6 = vmul.f32 %v2521_v2, %v2521_v2  ;;  %v2533_v7 = vld [vmem:[%s2512_s14 + $0x20] sm:$0xff]  ;;  %v2537_v9 = vld [vmem:[%s2512_s14 + $0x28] sm:$0xff]  ;;  %s163_s29 = scalar_lea.vmem %s3061_s2, %s2395_s26 }
  0x10   : > { %v203_v10 = vmul.f32 %v2524_v3, %v2524_v3  ;;  %v2543_v12 = vld [vmem:[%s2512_s14 + $0x30] sm:$0xff]  ;;  %v204_v14 = vmul.f32 %v2533_v7, %v2533_v7  ;;  %v2549_v16 = vld [vmem:[%s2512_s14 + $0x38] sm:$0xff]  ;;  %v205_v17 = vmul.f32 %v2537_v9, %v2537_v9  ;;  %v2557_v21 = vld [vmem:[%s2512_s14 + $0x40] sm:$0xff] }
  0x11   : > { %v233_v8 = vsel %vm232_vm0, %v200_v4, 0.0  ;;  %v234_v11 = vsel %vm232_vm0, %v201_v5, 0.0  ;;  %v236_v15 = vsel %vm232_vm0, %v202_v6, 0.0  ;;  %v206_v19 = vmul.f32 %v2543_v12, %v2543_v12  ;;  %v2563_v25 = vld [vmem:[%s2512_s14 + $0x48] sm:$0xff]  ;;  %v2570_v30 = vld [vmem:[%s2512_s14 + $0x50] sm:$0xff]  ;;  %v2576_v34 = vld [vmem:[%s2512_s14 + $0x58] sm:$0xff] }
  0x12   : > { %v235_v13 = vadd.f32 %v234_v11, %v233_v8  ;;  %v238_v20 = vsel %vm232_vm0, %v203_v10, 0.0  ;;  %v207_v23 = vmul.f32 %v2549_v16, %v2549_v16  ;;  %v240_v24 = vsel %vm232_vm0, %v204_v14, 0.0  ;;  %v2582_v38 = vld [vmem:[%s2512_s14 + $0x60] sm:$0xff]  ;;  %v2588_v42 = vld [vmem:[%s2512_s14 + $0x68] sm:$0xff]  ;;  %v2594_v46 = vld [vmem:[%s2512_s14 + $0x70] sm:$0xff] }
  0x13   : > { %v242_v27 = vsel %vm232_vm0, %v205_v17, 0.0  ;;  %v208_v28 = vmul.f32 %v2557_v21, %v2557_v21  ;;  %v244_v29 = vsel %vm232_vm0, %v206_v19, 0.0  ;;  %v209_v32 = vmul.f32 %v2563_v25, %v2563_v25  ;;  %v2600_v50 = vld [vmem:[%s2512_s14 + $0x78] sm:$0xff]  ;;  %v2606_v54 = vld [vmem:[%s2512_s14 + $0x80] sm:$0xff]  ;;  %v2612_v58 = vld [vmem:[%s2512_s14 + $0x88] sm:$0xff] }
  0x14   : > { %v237_v18 = vadd.f32 %v236_v15, %v235_v13  ;;  %v246_v33 = vsel %vm232_vm0, %v207_v23, 0.0  ;;  %v210_v36 = vmul.f32 %v2570_v30, %v2570_v30  ;;  %v211_v40 = vmul.f32 %v2576_v34, %v2576_v34  ;;  %v2618_v62 = vld [vmem:[%s2512_s14 + $0x90] sm:$0xff]  ;;  %v2624_v6 = vld [vmem:[%s2512_s14 + $0x98] sm:$0xff]  ;;  %v2630_v13 = vld [vmem:[%s2512_s14 + $0xa0] sm:$0xff] }
  0x15   : > { %v248_v37 = vsel %vm232_vm0, %v208_v28, 0.0  ;;  %v250_v41 = vsel %vm232_vm0, %v209_v32, 0.0  ;;  %v212_v44 = vmul.f32 %v2582_v38, %v2582_v38  ;;  %v213_v48 = vmul.f32 %v2588_v42, %v2588_v42  ;;  %v2642_v23 = vld [vmem:[%s2512_s14 + $0xb0] sm:$0xff]  ;;  %v2648_v28 = vld [vmem:[%s2512_s14 + $0xb8] sm:$0xff] }
  0x16   : > { %v239_v22 = vadd.f32 %v238_v20, %v237_v18  ;;  %v252_v45 = vsel %vm232_vm0, %v210_v36, 0.0  ;;  %v254_v49 = vsel %vm232_vm0, %v211_v40, 0.0  ;;  %v214_v52 = vmul.f32 %v2594_v46, %v2594_v46  ;;  %v2636_v18 = vld [vmem:[%s2512_s14 + $0xa8] sm:$0xff] }
  0x17   : > { %v256_v53 = vsel %vm232_vm0, %v212_v44, 0.0  ;;  %v215_v56 = vmul.f32 %v2600_v50, %v2600_v50  ;;  %v258_v57 = vsel %vm232_vm0, %v213_v48, 0.0  ;;  %v216_v60 = vmul.f32 %v2606_v54, %v2606_v54  ;;  %v2666_v44 = vld [vmem:[%s2512_s14 + $0xd0] sm:$0xff] }
  0x18   : > { %v241_v26 = vadd.f32 %v240_v24, %v239_v22  ;;  %v260_v61 = vsel %vm232_vm0, %v214_v52, 0.0  ;;  %v217_v4 = vmul.f32 %v2612_v58, %v2612_v58  ;;  %v218_v10 = vmul.f32 %v2618_v62, %v2618_v62 }
  0x19   : > { %v262_v5 = vsel %vm232_vm0, %v215_v56, 0.0  ;;  %v264_v11 = vsel %vm232_vm0, %v216_v60, 0.0  ;;  %v219_v15 = vmul.f32 %v2624_v6, %v2624_v6  ;;  %v220_v20 = vmul.f32 %v2630_v13, %v2630_v13  ;;  %v2684_v60 = vld [vmem:[%s2512_s14 + $0xe8] sm:$0xff] }
  0x1a   : > { %v243_v31 = vadd.f32 %v242_v27, %v241_v26  ;;  %v266_v17 = vsel %vm232_vm0, %v217_v4, 0.0  ;;  %v268_v22 = vsel %vm232_vm0, %v218_v10, 0.0  ;;  %v221_v26 = vmul.f32 %v2636_v18, %v2636_v18 }
  0x1b   : > { %v270_v27 = vsel %vm232_vm0, %v219_v15, 0.0  ;;  %v272_v32 = vsel %vm232_vm0, %v220_v20, 0.0  ;;  %v223_v36 = vmul.f32 %v2648_v28, %v2648_v28  ;;  %v226_v52 = vmul.f32 %v2666_v44, %v2666_v44 }
  0x1c   : > { %v245_v35 = vadd.f32 %v244_v29, %v243_v31  ;;  %v222_v31 = vmul.f32 %v2642_v23, %v2642_v23  ;;  %v229_v10 = vmul.f32 %v2684_v60, %v2684_v60 }
  0x1d   : > { %v278_v48 = vsel %vm232_vm0, %v223_v36, 0.0  ;;  %v284_v4 = vsel %vm232_vm0, %v226_v52, 0.0 }
  0x1e   : > { %v247_v39 = vadd.f32 %v246_v33, %v245_v35  ;;  %v2654_v33 = vld [vmem:[%s2512_s14 + $0xc0] sm:$0xff] }
  0x20   : > { %v249_v43 = vadd.f32 %v248_v37, %v247_v39  ;;  %v274_v37 = vsel %vm232_vm0, %v221_v26, 0.0  ;;  %v2660_v39 = vld [vmem:[%s2512_s14 + $0xc8] sm:$0xff] }
  0x22   : > { %v251_v47 = vadd.f32 %v250_v41, %v249_v43  ;;  %v224_v41 = vmul.f32 %v2654_v33, %v2654_v33  ;;  %v276_v43 = vsel %vm232_vm0, %v222_v31, 0.0 }
  0x24   : > { %v253_v51 = vadd.f32 %v252_v45, %v251_v47  ;;  %v225_v47 = vmul.f32 %v2660_v39, %v2660_v39 }
  0x26   : > { %v255_v55 = vadd.f32 %v254_v49, %v253_v51  ;;  %v2672_v49 = vld [vmem:[%s2512_s14 + $0xd8] sm:$0xff] }
  0x28   : > { %v257_v59 = vadd.f32 %v256_v53, %v255_v55  ;;  %v280_v53 = vsel %vm232_vm0, %v224_v41, 0.0  ;;  %v2678_v55 = vld [vmem:[%s2512_s14 + $0xe0] sm:$0xff] }
  0x2a   : > { %v259_v63 = vadd.f32 %v258_v57, %v257_v59  ;;  %v227_v57 = vmul.f32 %v2672_v49, %v2672_v49  ;;  %v282_v59 = vsel %vm232_vm0, %v225_v47, 0.0 }
  0x2c   : > { %v261_v8 = vadd.f32 %v260_v61, %v259_v63  ;;  %v228_v63 = vmul.f32 %v2678_v55, %v2678_v55 }
  0x2e   : > { %v263_v14 = vadd.f32 %v262_v5, %v261_v8  ;;  %v2690_v5 = vld [vmem:[%s2512_s14 + $0xf0] sm:$0xff] }
  0x30   : > { %v265_v19 = vadd.f32 %v264_v11, %v263_v14  ;;  %v286_v11 = vsel %vm232_vm0, %v227_v57, 0.0  ;;  %v2696_v14 = vld [vmem:[%s2512_s14 + $0xf8] sm:$0xff] }
  0x32   : > { %v267_v24 = vadd.f32 %v266_v17, %v265_v19  ;;  %v230_v17 = vmul.f32 %v2690_v5, %v2690_v5  ;;  %v288_v19 = vsel %vm232_vm0, %v228_v63, 0.0  ;;  %v2474_v63 = vmov 1983009808  }
  0x34   : > { %v269_v29 = vadd.f32 %v268_v22, %v267_v24  ;;  %v231_v22 = vmul.f32 %v2696_v14, %v2696_v14  ;;  %v290_v24 = vsel %vm232_vm0, %v229_v10, 0.0 }
  0x36   : > { %v271_v35 = vadd.f32 %v270_v27, %v269_v29  ;;  %v292_v27 = vsel %vm232_vm0, %v230_v17, 0.0  ;;  %v294_v31 = vsel %vm232_vm0, %v231_v22, 0.0  ;;  %v2475_v17 = vmov 1934713408  }
  0x38   : > { %v273_v40 = vadd.f32 %v272_v32, %v271_v35 }
  0x3a   : > { %v275_v45 = vadd.f32 %v274_v37, %v273_v40 }
  0x3c   : > { %v277_v51 = vadd.f32 %v276_v43, %v275_v45 }
  0x3e   : > { %v279_v56 = vadd.f32 %v278_v48, %v277_v51 }
  0x40   : > { %v281_v61 = vadd.f32 %v280_v53, %v279_v56 }
  0x42   : > { %v283_v8 = vadd.f32 %v282_v59, %v281_v61 }
  0x44   : > { %v285_v15 = vadd.f32 %v284_v4, %v283_v8  ;;  %v1397_v4 = vlaneseq }
  0x46   : > { %v287_v20 = vadd.f32 %v286_v11, %v285_v15  ;;  %v1398_v11 = vshrl.u32 %v1397_v4, 7 }
  0x48   : > { %v289_v26 = vadd.f32 %v288_v19, %v287_v20  ;;  %v1459_v19 = vunpack.c.l.s4 %v2475_v17 }
  0x4a   : > { %v291_v29 = vadd.f32 %v290_v24, %v289_v26 }
  0x4c   : > { %v293_v32 = vadd.f32 %v292_v27, %v291_v29  ;;  %v1460_v27 = vunpack.c.0.s8 %v1459_v19 }
  0x4e   : > { %v295_v35 = vadd.f32 %v294_v31, %v293_v32 }
  0x50   : > { %v296_v36 = vadd.f32 1e-06, %v295_v35 }
  0x52   : > { %2454 = vrsqrt.f32 %v296_v36  ;;  %vm299_vm1 = vcmp.eq.f32.partialorder %v296_v36, inf  ;;  %v302_v40 = vand.u32 2147483648, %v296_v36  ;;  %vm301_vm2 = vcmp.eq.f32.partialorder %v296_v36, 0.0 }
  0x5f   : > { %v2455_v37 = vpop.eup %2454 }
  0x60   : > { %v298_v41 = vmul.f32 %v2455_v37, %v296_v36 }
  0x62   : > { %v300_v43 = vsel %vm299_vm1, %v296_v36, %v298_v41 }
  0x63   : > { %v303_v45 = vsel %vm301_vm2, %v302_v40, %v300_v43 }
  0x64   : > { %2456 = vrcp.f32 %v303_v45 }
  0x71   : > { %v2457_v47 = vpop.eup %2456 }
  0x72   : > { %v307_v48 = vmul.f32 %v2457_v47, %v2521_v2  ;;  %v305_v51 = vmul.f32 %v2457_v47, %v2515_v0  ;;  %v308_v52 = vmul.f32 %v2457_v47, %v2524_v3  ;;  %v306_v53 = vmul.f32 %v2457_v47, %v2518_v1 }
  0x73   : > { %v310_v56 = vmul.f32 %v2457_v47, %v2537_v9  ;;  %v309_v57 = vmul.f32 %v2457_v47, %v2533_v7  ;;  %v312_v59 = vmul.f32 %v2457_v47, %v2549_v16  ;;  %v311_v2 = vmul.f32 %v2457_v47, %v2543_v12 }
  0x74   : > { %432 = vxpose.xlu1.b32.start.end [1/1] (short) (narrow) %v307_v48, 8  ;;  %368 = vxpose.xlu0.b32.start.end [1/1] (short) (narrow) %v305_v51, 8  ;;  %v314_v0 = vmul.f32 %v2457_v47, %v2563_v25  ;;  %v313_v3 = vmul.f32 %v2457_v47, %v2557_v21  ;;  %v316_v1 = vmul.f32 %v2457_v47, %v2576_v34 }
  0x75   : > { %v315_v9 = vmul.f32 %v2457_v47, %v2570_v30  ;;  %v318_v7 = vmul.f32 %v2457_v47, %v2588_v42  ;;  %v317_v16 = vmul.f32 %v2457_v47, %v2582_v38  ;;  %v320_v12 = vmul.f32 %v2457_v47, %v2600_v50 }
  0x76   : > { %v319_v25 = vmul.f32 %v2457_v47, %v2594_v46  ;;  %v322_v21 = vmul.f32 %v2457_v47, %v2612_v58  ;;  %v321_v34 = vmul.f32 %v2457_v47, %v2606_v54  ;;  %v324_v30 = vmul.f32 %v2457_v47, %v2624_v6 }
  0x77   : > { %v323_v42 = vmul.f32 %v2457_v47, %v2618_v62  ;;  %v326_v38 = vmul.f32 %v2457_v47, %v2636_v18  ;;  %v325_v50 = vmul.f32 %v2457_v47, %v2630_v13  ;;  %v328_v46 = vmul.f32 %v2457_v47, %v2648_v28 }
  0x78   : > { %464 = vxpose.xlu1.b32.start.end [1/1] (short) (narrow) %v308_v52, 8  ;;  %400 = vxpose.xlu0.b32.start.end [1/1] (short) (narrow) %v306_v53, 8  ;;  %v327_v58 = vmul.f32 %v2457_v47, %v2642_v23  ;;  %v330_v54 = vmul.f32 %v2457_v47, %v2660_v39  ;;  %v329_v6 = vmul.f32 %v2457_v47, %v2654_v33 }
  0x79   : > { %v332_v62 = vmul.f32 %v2457_v47, %v2672_v49  ;;  %v331_v18 = vmul.f32 %v2457_v47, %v2666_v44  ;;  %v334_v13 = vmul.f32 %v2457_v47, %v2684_v60  ;;  %v333_v28 = vmul.f32 %v2457_v47, %v2678_v55 }
  0x7a   : > { %v336_v23 = vmul.f32 %v2457_v47, %v2696_v14  ;;  %v335_v39 = vmul.f32 %v2457_v47, %v2690_v5  ;;  %v1395_v49 = vunpack.c.l.s4 %v2474_v63 }
  0x7c   : > { %528 = vxpose.xlu1.b32.start.end [1/1] (short) (narrow) %v310_v56, 8  ;;  %496 = vxpose.xlu0.b32.start.end [1/1] (short) (narrow) %v309_v57, 8  ;;  %v1396_v10 = vunpack.c.0.s8 %v1395_v49  ;;  %v2757_v56 = vsub.s32 %v1460_v27, %v1398_v11 }
  0x7e   : > { %v2738_v20 = vsub.s32 %v1396_v10, %v1398_v11 }
  0x80   : > { %592 = vxpose.xlu1.b32.start.end [1/1] (short) (narrow) %v312_v59, 8  ;;  %560 = vxpose.xlu0.b32.start.end [1/1] (short) (narrow) %v311_v2, 8 }
  0x84   : > { %656 = vxpose.xlu1.b32.start.end [1/1] (short) (narrow) %v314_v0, 8  ;;  %624 = vxpose.xlu0.b32.start.end [1/1] (short) (narrow) %v313_v3, 8 }
  0x88   : > { %720 = vxpose.xlu1.b32.start.end [1/1] (short) (narrow) %v316_v1, 8  ;;  %688 = vxpose.xlu0.b32.start.end [1/1] (short) (narrow) %v315_v9, 8 }
  0x8c   : > { %784 = vxpose.xlu1.b32.start.end [1/1] (short) (narrow) %v318_v7, 8  ;;  %752 = vxpose.xlu0.b32.start.end [1/1] (short) (narrow) %v317_v16, 8 }
  0x90   : > { %848 = vxpose.xlu1.b32.start.end [1/1] (short) (narrow) %v320_v12, 8  ;;  %816 = vxpose.xlu0.b32.start.end [1/1] (short) (narrow) %v319_v25, 8 }
  0x94   : > { %912 = vxpose.xlu1.b32.start.end [1/1] (short) (narrow) %v322_v21, 8  ;;  %880 = vxpose.xlu0.b32.start.end [1/1] (short) (narrow) %v321_v34, 8 }
  0x98   : > { %976 = vxpose.xlu1.b32.start.end [1/1] (short) (narrow) %v324_v30, 8  ;;  %944 = vxpose.xlu0.b32.start.end [1/1] (short) (narrow) %v323_v42, 8 }
  0x9c   : > { %1040 = vxpose.xlu1.b32.start.end [1/1] (short) (narrow) %v326_v38, 8  ;;  %1008 = vxpose.xlu0.b32.start.end [1/1] (short) (narrow) %v325_v50, 8 }
  0xa0   : > { %1104 = vxpose.xlu1.b32.start.end [1/1] (short) (narrow) %v328_v46, 8  ;;  %1072 = vxpose.xlu0.b32.start.end [1/1] (short) (narrow) %v327_v58, 8 }
  0xa4   : > { %1168 = vxpose.xlu1.b32.start.end [1/1] (short) (narrow) %v330_v54, 8  ;;  %1136 = vxpose.xlu0.b32.start.end [1/1] (short) (narrow) %v329_v6, 8 }
  0xa8   : > { %1232 = vxpose.xlu1.b32.start.end [1/1] (short) (narrow) %v332_v62, 8  ;;  %1200 = vxpose.xlu0.b32.start.end [1/1] (short) (narrow) %v331_v18, 8 }
  0xac   : > { %1296 = vxpose.xlu1.b32.start.end [1/1] (short) (narrow) %v334_v13, 8  ;;  %1264 = vxpose.xlu0.b32.start.end [1/1] (short) (narrow) %v333_v28, 8 }
  0xb0   : > { %1360 = vxpose.xlu1.b32.start.end [1/1] (short) (narrow) %v336_v23, 8  ;;  %1328 = vxpose.xlu0.b32.start.end [1/1] (short) (narrow) %v335_v39, 8 }
  0xf0   : > { %v448_v33 = vpop.trf.xlu1  ;;  %v384_v61 = vpop.trf.xlu0 }
  0xf1   : > { %v1392_v14 = vcombine.low %v384_v61, %v448_v33  ;;  %v1393_v36 = vcombine.high %v384_v61, %v448_v33 }
  0xf3   : > { %v1400_v37 = vrot.slane %v1392_v14, %v2738_v20  ;;  %v2760_v2 = vrot.slane %v1393_v36, %v2738_v20 }
  0xf4   : > { %v480_v44 = vpop.trf.xlu1  ;;  %v416_v8 = vpop.trf.xlu0 }
  0xf5   : > { %v1408_v60 = vcombine.low %v416_v8, %v480_v44  ;;  %v1409_v5 = vcombine.high %v416_v8, %v480_v44 }
  0xf7   : > { %v1416_v22 = vrot.slane %v1408_v60, %v2738_v20  ;;  %v2751_v47 = vrot.slane %v1409_v5, %v2738_v20 }
  0xf8   : > { %v544_v15 = vpop.trf.xlu1  ;;  %v512_v55 = vpop.trf.xlu0 }
  0xf9   : > { %v1456_v48 = vcombine.low %v1400_v37, %v1416_v22  ;;  %v1457_v51 = vcombine.high %v1400_v37, %v1416_v22  ;;  %v1472_v9 = vcombine.low %v2760_v2, %v2751_v47 }
  0xfb   : > { %v1471_v12 = vrot.slane %v1457_v51, %v2757_v56  ;;  %v2776_v25 = vrot.slane %v1456_v48, %v2757_v56  ;;  %v2790_v58 = vrot.slane %v1472_v9, %v2757_v56  ;;  %v1473_v48 = vcombine.high %v2760_v2, %v2751_v47 }
  0xfc   : > { %v608_v24 = vpop.trf.xlu1  ;;  %v576_v26 = vpop.trf.xlu0 }
  0xfd   : > { %v1440_v29 = vcombine.low %v544_v15, %v608_v24  ;;  %v1441_v31 = vcombine.high %v544_v15, %v608_v24  ;;  %v1424_v32 = vcombine.low %v512_v55, %v576_v26  ;;  %v1425_v35 = vcombine.high %v512_v55, %v576_v26 }
  0xff   : > { %v1448_v40 = vrot.slane %v1440_v29, %v2738_v20  ;;  %v2744_v41 = vrot.slane %v1441_v31, %v2738_v20  ;;  %v1432_v43 = vrot.slane %v1424_v32, %v2738_v20  ;;  %v2748_v45 = vrot.slane %v1425_v35, %v2738_v20 }
 0x100   : > { %v2753_v52 = vpop.trf.xlu1  ;;  %v2755_v53 = vpop.trf.xlu0 }
 0x101   : > { %v1488_v57 = vcombine.low %v1432_v43, %v1448_v40  ;;  %v1489_v59 = vcombine.high %v1432_v43, %v1448_v40  ;;  %v1504_v0 = vcombine.low %v2748_v45, %v2744_v41 }
 0x103   : > { %v1503_v3 = vrot.slane %v1489_v59, %v2757_v56  ;;  %v2766_v1 = vrot.slane %v1488_v57, %v2757_v56  ;;  %v2781_v30 = vrot.slane %v1504_v0, %v2757_v56  ;;  %v1505_v59 = vcombine.high %v2748_v45, %v2744_v41 }
 0x104   : > { %v2770_v7 = vpop.trf.xlu1  ;;  %v2772_v16 = vpop.trf.xlu0 }
 0x105   : > { %v1522_v21 = vcombine.low %v1471_v12, %v1503_v3  ;;  %v1521_v34 = vcombine.high %v2776_v25, %v2766_v1  ;;  %v1544_v42 = vcombine.low %v2753_v52, %v2770_v7  ;;  %v1528_v38 = vcombine.low %v2755_v53, %v2772_v16 }
 0x106   : > { %v1524_v54 = vcombine.low %v2790_v58, %v2781_v30  ;;  %v1520_v6 = vcombine.low %v2776_v25, %v2766_v1  ;;  %v1523_v29 = vcombine.high %v1471_v12, %v1503_v3  ;;  %v1545_v0 = vcombine.high %v2753_v52, %v2770_v7 }
 0x107   : > { %1956 = vrot.lane.b32.xlu1 %v1522_v21, %s2476_s15  ;;  %1940 = vrot.lane.b32.xlu0 %v1521_v34, %s2477_s16  ;;  %v1552_v62 = vrot.slane %v1544_v42, %v2738_v20  ;;  %v1536_v18 = vrot.slane %v1528_v38, %v2738_v20  ;;  %v1529_v3 = vcombine.high %v2755_v53, %v2772_v16 }
 0x108   : > { %v800_v50 = vpop.trf.xlu1  ;;  %v768_v46 = vpop.trf.xlu0  ;;  %v2848_v53 = vrot.slane %v1545_v0, %v2738_v20  ;;  %v2851_v16 = vrot.slane %v1473_v48, %v2757_v56  ;;  %v2854_v38 = vrot.slane %v1505_v59, %v2757_v56 }
 0x109   : > { %v1592_v63 = vcombine.low %v1536_v18, %v1552_v62  ;;  %v1593_v49 = vcombine.high %v1536_v18, %v1552_v62 }
 0x10b   : > { %1988 = vrot.lane.b32.xlu0 %v1524_v54, %s2478_s17  ;;  %v1607_v17 = vrot.slane %v1593_v49, %v2757_v56  ;;  %v2815_v19 = vrot.slane %v1592_v63, %v2757_v56 }
 0x10c   : > { %v864_v13 = vpop.trf.xlu1  ;;  %v832_v28 = vpop.trf.xlu0 }
 0x10d   : > { %v1576_v23 = vcombine.low %v800_v50, %v864_v13  ;;  %v1560_v39 = vcombine.low %v768_v46, %v832_v28  ;;  %v1577_v32 = vcombine.high %v800_v50, %v864_v13  ;;  %v1561_v35 = vcombine.high %v768_v46, %v832_v28 }
 0x10e   : > { %v2857_v50 = vrot.slane %v1529_v3, %v2738_v20 }
 0x10f   : > { %v1584_v33 = vrot.slane %v1576_v23, %v2738_v20  ;;  %v1568_v61 = vrot.slane %v1560_v39, %v2738_v20  ;;  %v2839_v12 = vrot.slane %v1577_v32, %v2738_v20  ;;  %v2842_v21 = vrot.slane %v1561_v35, %v2738_v20 }
 0x110   : > { %v2801_v4 = vpop.trf.xlu1  ;;  %v2803_v44 = vpop.trf.xlu0 }
 0x111   : > { %v1624_v8 = vcombine.low %v1568_v61, %v1584_v33  ;;  %v1625_v10 = vcombine.high %v1568_v61, %v1584_v33  ;;  %v1640_v46 = vcombine.low %v2842_v21, %v2839_v12 }
 0x113   : > { %v1639_v11 = vrot.slane %v1625_v10, %v2757_v56  ;;  %v2807_v60 = vrot.slane %v1624_v8, %v2757_v56 }
 0x114   : > { %v2809_v15 = vpop.trf.xlu1  ;;  %v2811_v55 = vpop.trf.xlu0 }
 0x115   : > { %v1659_v14 = vcombine.high %v1607_v17, %v1639_v11  ;;  %v1657_v5 = vcombine.high %v2815_v19, %v2807_v60  ;;  %v1680_v22 = vcombine.low %v2801_v4, %v2809_v15  ;;  %v1664_v24 = vcombine.low %v2803_v44, %v2811_v55 }
 0x116   : > { %v1656_v31 = vcombine.low %v2815_v19, %v2807_v60  ;;  %v1658_v9 = vcombine.low %v1607_v17, %v1639_v11  ;;  %v1681_v61 = vcombine.high %v2801_v4, %v2809_v15  ;;  %v1665_v63 = vcombine.high %v2803_v44, %v2811_v55 }
 0x117   : > { %1974 = vrot.lane.b32.xlu0 %v1659_v14, %s2479_s18  ;;  %1942 = vrot.lane.b32.xlu1 %v1657_v5, %s2477_s16  ;;  %v1688_v36 = vrot.slane %v1680_v22, %v2738_v20  ;;  %v1672_v37 = vrot.slane %v1664_v24, %v2738_v20  ;;  %v1526_v24 = vcombine.low %v2851_v16, %v2854_v38 }
 0x118   : > { %v1056_v26 = vpop.trf.xlu1  ;;  %v1024_v27 = vpop.trf.xlu0  ;;  %v1525_v4 = vcombine.high %v2790_v58, %v2781_v30  ;;  %v1608_v44 = vcombine.low %v2857_v50, %v2848_v53  ;;  %v1648_v58 = vrot.slane %v1640_v46, %v2757_v56  ;;  %v2896_v35 = vrot.slane %v1665_v63, %v2738_v20 }
 0x119   : > { %v1728_v34 = vcombine.low %v1672_v37, %v1688_v36  ;;  %v1729_v42 = vcombine.high %v1672_v37, %v1688_v36 }
 0x11a   : > { %v1616_v0 = vrot.slane %v1608_v44, %v2757_v56 }
 0x11b   : > { %1972 = vrot.lane.b32.xlu1 %v1523_v29, %s2479_s18  ;;  %v1743_v39 = vrot.slane %v1729_v42, %v2757_v56  ;;  %v2867_v33 = vrot.slane %v1728_v34, %v2757_v56  ;;  %v2892_v29 = vrot.slane %v1681_v61, %v2738_v20 }
 0x11c   : > { %v1120_v40 = vpop.trf.xlu1  ;;  %v1088_v43 = vpop.trf.xlu0 }
 0x11d   : > { %v1712_v51 = vcombine.low %v1056_v26, %v1120_v40  ;;  %v1696_v57 = vcombine.low %v1024_v27, %v1088_v43  ;;  %v1713_v18 = vcombine.high %v1056_v26, %v1120_v40  ;;  %v1697_v13 = vcombine.high %v1024_v27, %v1088_v43 }
 0x11e   : > { %v1744_v34 = vcombine.low %v2896_v35, %v2892_v29 }
 0x11f   : > { %v1720_v47 = vrot.slane %v1712_v51, %v2738_v20  ;;  %v1704_v2 = vrot.slane %v1696_v57, %v2738_v20  ;;  %1958 = vrot.lane.b32.xlu1 %v1658_v9, %s2476_s15  ;;  %v2884_v15 = vrot.slane %v1713_v18, %v2738_v20  ;;  %v2887_v55 = vrot.slane %v1697_v13, %v2738_v20 }
 0x120   : > { %v1184_v41 = vpop.trf.xlu1  ;;  %v1152_v45 = vpop.trf.xlu0 }
 0x121   : > { %v1760_v52 = vcombine.low %v1704_v2, %v1720_v47  ;;  %v1761_v7 = vcombine.high %v1704_v2, %v1720_v47  ;;  %v1776_v51 = vcombine.low %v2887_v55, %v2884_v15 }
 0x123   : > { %v1775_v54 = vrot.slane %v1761_v7, %v2757_v56  ;;  %v2863_v62 = vrot.slane %v1760_v52, %v2757_v56  ;;  %v1784_v13 = vrot.slane %v1776_v51, %v2757_v56  ;;  %v198_v51 = vld [vmem:[%s158_s25 + $0x10] sm:$0xff] }
 0x124   : > { %v1248_v28 = vpop.trf.xlu1  ;;  %v1216_v23 = vpop.trf.xlu0 }
 0x125   : > { %v1817_v49 = vcombine.high %v1184_v41, %v1248_v28  ;;  %v1801_v8 = vcombine.high %v1152_v45, %v1216_v23  ;;  %v1816_v10 = vcombine.low %v1184_v41, %v1248_v28  ;;  %v1800_v11 = vcombine.low %v1152_v45, %v1216_v23 }
 0x126   : > { %v1794_v17 = vcombine.low %v1743_v39, %v1775_v54  ;;  %v1793_v14 = vcombine.high %v2867_v33, %v2863_v62  ;;  %v1792_v40 = vcombine.low %v2867_v33, %v2863_v62  ;;  %v1795_v41 = vcombine.high %v1743_v39, %v1775_v54 }
 0x127   : > { %v1831_v5 = vrot.slane %v1817_v49, %v2738_v20  ;;  %v1815_v22 = vrot.slane %v1801_v8, %v2738_v20  ;;  %v1824_v36 = vrot.slane %v1816_v10, %v2738_v20  ;;  %v1808_v37 = vrot.slane %v1800_v11, %v2738_v20 }
 0x128   : > { %1960 = vrot.lane.b32.xlu0 %v1794_v17, %s2476_s15  ;;  %1944 = vrot.lane.b32.xlu1 %v1793_v14, %s2477_s16  ;;  %v1312_v26 = vpop.trf.xlu1  ;;  %v1280_v27 = vpop.trf.xlu0  ;;  %v1660_v45 = vcombine.low %v1616_v0, %v1648_v58  ;;  %v1527_v54 = vcombine.high %v2851_v16, %v2854_v38  ;;  %v1752_v39 = vrot.slane %v1744_v34, %v2757_v56 }
 0x129   : > { %v1880_v32 = vcombine.low %v1815_v22, %v1831_v5  ;;  %v1881_v30 = vcombine.high %v1815_v22, %v1831_v5  ;;  %v1864_v42 = vcombine.low %v1808_v37, %v1824_v36  ;;  %v1641_v11 = vcombine.high %v2842_v21, %v2839_v12 }
 0x12a   : > { %v1865_v17 = vcombine.high %v1808_v37, %v1824_v36  ;;  %v1796_v16 = vcombine.low %v1752_v39, %v1784_v13  ;;  %v1609_v21 = vcombine.high %v2857_v50, %v2848_v53  ;;  %v1745_v36 = vcombine.high %v2896_v35, %v2892_v29 }
 0x12b   : > { %v2903_v43 = vrot.slane %v1881_v30, %v2757_v56  ;;  %v2906_v48 = vrot.slane %v1880_v32, %v2757_v56  ;;  %v2926_v49 = vrot.slane %v1864_v42, %v2757_v56  ;;  %v1655_v30 = vrot.slane %v1641_v11, %v2757_v56 }
 0x12c   : > { %2020 = vrot.lane.b32.xlu0 %v1526_v24, %s2480_s19  ;;  %2004 = vrot.lane.b32.xlu1 %v1525_v4, %s2481_s20  ;;  %v1376_v57 = vpop.trf.xlu1  ;;  %v1344_v59 = vpop.trf.xlu0  ;;  %v1879_v44 = vrot.slane %v1865_v17, %v2757_v56  ;;  %v1623_v53 = vrot.slane %v1609_v21, %v2757_v56  ;;  %v1797_v29 = vcombine.high %v1752_v39, %v1784_v13 }
 0x12d   : > { %v1848_v3 = vcombine.low %v1312_v26, %v1376_v57  ;;  %v1849_v9 = vcombine.high %v1312_v26, %v1376_v57  ;;  %v1832_v47 = vcombine.low %v1280_v27, %v1344_v59  ;;  %v1833_v2 = vcombine.high %v1280_v27, %v1344_v59  ;;  %v199_v57 = vld [vmem:[%s158_s25 + $0x18] sm:$0xff] }
 0x12e   : > { %v1661_v26 = vcombine.high %v1616_v0, %v1648_v58  ;;  %v1777_v27 = vcombine.high %v2887_v55, %v2884_v15  ;;  %v1663_v37 = vcombine.high %v1623_v53, %v1655_v30  ;;  %v1759_v15 = vrot.slane %v1745_v36, %v2757_v56 }
 0x12f   : > { %v1856_v52 = vrot.slane %v1848_v3, %v2738_v20  ;;  %v1863_v7 = vrot.slane %v1849_v9, %v2738_v20  ;;  %v1840_v46 = vrot.slane %v1832_v47, %v2738_v20  ;;  %v1847_v18 = vrot.slane %v1833_v2, %v2738_v20 }
 0x130   : > { %1976 = vrot.lane.b32.xlu0 %v1795_v41, %s2479_s18  ;;  %1990 = vrot.lane.b32.xlu1 %v1660_v45, %s2478_s17  ;;  %v1791_v58 = vrot.slane %v1777_v27, %v2757_v56  ;;  %v1662_v55 = vcombine.low %v1623_v53, %v1655_v30  ;;  %v339_v3 = vmul.f32 %v198_v51, %v198_v51 }
 0x131   : > { %v1896_v28 = vcombine.low %v1840_v46, %v1856_v52  ;;  %v1897_v23 = vcombine.high %v1840_v46, %v1856_v52  ;;  %v1912_v61 = vcombine.low %v1847_v18, %v1863_v7  ;;  %v1913_v63 = vcombine.high %v1847_v18, %v1863_v7 }
 0x132   : > { %v1799_v35 = vcombine.high %v1759_v15, %v1791_v58  ;;  %v340_v9 = vmul.f32 %v199_v57, %v199_v57  ;;  %v345_v34 = vsel %vm341_vm3, %v339_v3, 0.0 }
 0x133   : > { %v2929_v20 = vrot.slane %v1896_v28, %v2757_v56  ;;  %v1927_v8 = vrot.slane %v1913_v63, %v2757_v56  ;;  %v1920_v10 = vrot.slane %v1912_v61, %v2757_v56  ;;  %v1911_v14 = vrot.slane %v1897_v23, %v2757_v56  ;;  %v2972_v56 = vld [vmem:[%s158_s25 + $0x8] sm:$0xff] }
 0x134   : > { %2036 = vrot.lane.b32.xlu0 %v1527_v54, %s2482_s21  ;;  %v338_v0 = vmul.f32 %v2972_v56, %v2972_v56  ;;  %v347_v41 = vsel %vm341_vm3, %v340_v9, 0.0 }
 0x135   : > { %v1929_v38 = vcombine.high %v2926_v49, %v2929_v20  ;;  %v1935_v5 = vcombine.high %v2903_v43, %v1927_v8  ;;  %v1932_v22 = vcombine.low %v2906_v48, %v1920_v10  ;;  %v1933_v24 = vcombine.high %v2906_v48, %v1920_v10  ;;  %v2970_v48 = vld [vmem:[%s158_s25] sm:$0xff] }
 0x136   : > { %v1934_v4 = vcombine.low %v2903_v43, %v1927_v8  ;;  %v1928_v12 = vcombine.low %v2926_v49, %v2929_v20  ;;  %v1931_v32 = vcombine.high %v1879_v44, %v1911_v14  ;;  %v1930_v50 = vcombine.low %v1879_v44, %v1911_v14 }
 0x137   : > { %1946 = vrot.lane.b32.xlu1 %v1929_v38, %s2477_s16  ;;  %v1798_v43 = vcombine.low %v1759_v15, %v1791_v58  ;;  %v337_v59 = vmul.f32 %v2970_v48, %v2970_v48  ;;  %v343_v2 = vsel %vm341_vm3, %v338_v0, 0.0 }
 0x138   : > { %1992 = vrot.lane.b32.xlu0 %v1796_v16, %s2478_s17 }
 0x139   : > { %v342_v47 = vsel %vm341_vm3, %v337_v59, 0.0 }
 0x13a   : > { %v344_v42 = vadd.f32 %v343_v2, %v342_v47 }
 0x13b   : > { %2006 = vrot.lane.b32.xlu1 %v1661_v26, %s2481_s20 }
 0x13c   : > { %1978 = vrot.lane.b32.xlu0 %v1931_v32, %s2479_s18  ;;  %v346_v45 = vadd.f32 %v345_v34, %v344_v42 }
 0x13e   : > { %v348_v52 = vadd.f32 %v347_v41, %v346_v45 }
 0x13f   : > { %1962 = vrot.lane.b32.xlu1 %v1930_v50, %s2476_s15 }
 0x140   : > { %2038 = vrot.lane.b32.xlu0 %v1663_v37, %s2482_s21  ;;  %v349_v7 = vrot.slane %v348_v52, 4 }
 0x142   : > { %v350_v46 = vadd.f32 %v349_v7, %v348_v52 }
 0x143   : > { %2022 = vrot.lane.b32.xlu1 %v1662_v55, %s2480_s19 }
 0x144   : > { %2024 = vrot.lane.b32.xlu0 %v1798_v43, %s2480_s19  ;;  %v351_v18 = vrot.slane %v350_v46, 2 }
 0x146   : > { %v352_v13 = vadd.f32 %v351_v18, %v350_v46 }
 0x147   : > { %2008 = vrot.lane.b32.xlu1 %v1797_v29, %s2481_s20 }
 0x148   : > { %2040 = vrot.lane.b32.xlu0 %v1799_v35, %s2482_s21  ;;  %v353_v28 = vrot.slane %v352_v13, 1 }
 0x14a   : > { %v354_v23 = vadd.f32 %v353_v28, %v352_v13 }
 0x14b   : > { %1994 = vrot.lane.b32.xlu1 %v1932_v22, %s2478_s17 }
 0x14c   : > { %2042 = vrot.lane.b32.xlu0 %v1935_v5, %s2482_s21  ;;  %v355_v61 = vadd.f32 1e-06, %v354_v23 }
 0x14e   : > { %2458 = vrsqrt.f32 %v355_v61  ;;  %vm358_vm4 = vcmp.eq.f32.partialorder %v355_v61, inf  ;;  %v361_v54 = vand.u32 2147483648, %v355_v61  ;;  %vm360_vm5 = vcmp.eq.f32.partialorder %v355_v61, 0.0 }
 0x14f   : > { %2010 = vrot.lane.b32.xlu1 %v1933_v24, %s2481_s20 }
 0x153   : > { %2026 = vrot.lane.b32.xlu1 %v1934_v4, %s2480_s19 }
 0x15b   : > { %v2459_v63 = vpop.eup %2458 }
 0x15c   : > { %v357_v39 = vmul.f32 %v2459_v63, %v355_v61 }
 0x15e   : > { %v359_v8 = vsel %vm358_vm4, %v355_v61, %v357_v39 }
 0x15f   : > { %v362_v10 = vsel %vm360_vm5, %v361_v54, %v359_v8 }
 0x160   : > { %2460 = vrcp.f32 %v362_v10 }
 0x16d   : > { %v2461_v11 = vpop.eup %2460 }
 0x16e   : > { %v367_v17 = vmul.f32 %v2461_v11, %v199_v57  ;;  %v366_v16 = vmul.f32 %v2461_v11, %v198_v51  ;;  %v365_v45 = vmul.f32 %v2461_v11, %v2972_v56 }
 0x170   : > { %2408 = vmatprep.subr.mxu0 %v367_v17  ;;  %2428 = vmatprep.subr.mxu1 %v367_v17 }
 0x171   : > { %2409 = vmatpush3.msra.mxu0 %v367_v17  ;;  %2432 = vmatpush3.msra.mxu1 %v367_v17 }
 0x172   : > { %2410 = vmatprep.subr.mxu0 %v366_v16  ;;  %2429 = vmatprep.subr.mxu1 %v366_v16 }
 0x173   : > { %2411 = vmatpush3.msra.mxu0 %v366_v16  ;;  %2433 = vmatpush3.msra.mxu1 %v366_v16 }
 0x174   : > { %2412 = vmatprep.subr.mxu0 %v365_v45  ;;  %2430 = vmatprep.subr.mxu1 %v365_v45 }
 0x175   : > { %2413 = vmatpush3.msra.mxu0 %v365_v45  ;;  %2434 = vmatpush3.msra.mxu1 %v365_v45 }
 0x179   : > { %v1957_v38 = vpop.permute.xlu1 %1956  ;;  %v1941_v5 = vpop.permute.xlu0 %1940 }
 0x17a   : > { %v2048_v27 = vsel %vm232_vm0, %v1520_v6, %v1941_v5 }
 0x17b   : > { %v2053_v32 = vsel %vm2052_vm6, %v2048_v27, %v1957_v38 }
 0x17d   : > { %v1989_v24 = vpop.permute.xlu0 %1988 }
 0x189   : > { %v1943_v14 = vpop.permute.xlu1 %1942  ;;  %v1975_v4 = vpop.permute.xlu0 %1974 }
 0x18a   : > { %v2049_v51 = vsel %vm232_vm0, %v1656_v31, %v1943_v14 }
 0x18d   : > { %v1973_v22 = vpop.permute.xlu1 %1972 }
 0x18e   : > { %v2058_v36 = vsel %vm2057_vm7, %v2053_v32, %v1973_v22 }
 0x18f   : > { %v2063_v50 = vsel %vm2062_vm8, %v2058_v36, %v1989_v24 }
 0x191   : > { %v1959_v21 = vpop.permute.xlu1 %1958 }
 0x192   : > { %v2054_v57 = vsel %vm2052_vm6, %v2049_v51, %v1959_v21 }
 0x193   : > { %v2059_v3 = vsel %vm2057_vm7, %v2054_v57, %v1975_v4 }
 0x19a   : > { %v1945_v44 = vpop.permute.xlu1 %1944  ;;  %v1961_v26 = vpop.permute.xlu0 %1960 }
 0x19b   : > { %v2050_v9 = vsel %vm232_vm0, %v1792_v40, %v1945_v44  ;;  %v364_v40 = vmul.f32 %v2461_v11, %v2970_v48 }
 0x19c   : > { %v2055_v31 = vsel %vm2052_vm6, %v2050_v9, %v1961_v26 }
 0x19d   : > { %2414 = vmatprep.subr.mxu0 %v364_v40  ;;  %2431 = vmatprep.subr.mxu1 %v364_v40 }
 0x19e   : > { %v2021_v30 = vpop.permute.xlu0 %2020  ;;  %v2005_v53 = vpop.permute.xlu1 %2004  ;;  %2415 = vmatpush3.msra.mxu0 %v364_v40  ;;  %2435 = vmatpush3.msra.mxu1 %v364_v40 }
 0x19f   : > { %v2068_v58 = vsel %vm2067_vm9, %v2063_v50, %v2005_v53 }
 0x1a0   : > { %v2073_v25 = vsel %vm2072_vm10, %v2068_v58, %v2021_v30 }
 0x1a2   : > { %v1977_v37 = vpop.permute.xlu0 %1976  ;;  %v1991_v1 = vpop.permute.xlu1 %1990 }
 0x1a3   : > { %v2064_v47 = vsel %vm2062_vm8, %v2059_v3, %v1991_v1  ;;  %v2060_v41 = vsel %vm2057_vm7, %v2055_v31, %v1977_v37 }
 0x1a6   : > { %v2037_v6 = vpop.permute.xlu0 %2036 }
 0x1a7   : > { %v2078_v15 = vsel %vm2077_vm11, %v2073_v25, %v2037_v6 }
 0x1a8   : > { %2082 = vxpose.xlu1.b32.start [1/4] (short) (narrow) %v2078_v15, 64 }
 0x1a9   : > { %v1947_v55 = vpop.permute.xlu1 %1946 }
 0x1aa   : > { %v1993_v43 = vpop.permute.xlu0 %1992  ;;  %v2051_v48 = vsel %vm232_vm0, %v1928_v12, %v1947_v55 }
 0x1ab   : > { %v2065_v62 = vsel %vm2062_vm8, %v2060_v41, %v1993_v43 }
 0x1ad   : > { %v2007_v29 = vpop.permute.xlu1 %2006 }
 0x1ae   : > { %v1979_v35 = vpop.permute.xlu0 %1978  ;;  %v2069_v2 = vsel %vm2067_vm9, %v2064_v47, %v2007_v29 }
 0x1b1   : > { %v1963_v59 = vpop.permute.xlu1 %1962 }
 0x1b2   : > { %v2039_v0 = vpop.permute.xlu0 %2038  ;;  %v2056_v56 = vsel %vm2052_vm6, %v2051_v48, %v1963_v59 }
 0x1b3   : > { %v2061_v23 = vsel %vm2057_vm7, %v2056_v56, %v1979_v35 }
 0x1b5   : > { %v2023_v34 = vpop.permute.xlu1 %2022 }
 0x1b6   : > { %v2074_v60 = vsel %vm2072_vm10, %v2069_v2, %v2023_v34  ;;  %v2025_v19 = vpop.permute.xlu0 %2024 }
 0x1b7   : > { %v2079_v42 = vsel %vm2077_vm11, %v2074_v60, %v2039_v0 }
 0x1b8   : > { %2083 = vxpose.xlu1.b32.cont [2/4] (short) (narrow) %v2079_v42, 64 }
 0x1b9   : > { %v2009_v33 = vpop.permute.xlu1 %2008 }
 0x1ba   : > { %v2070_v52 = vsel %vm2067_vm9, %v2065_v62, %v2009_v33  ;;  %v2041_v46 = vpop.permute.xlu0 %2040 }
 0x1bb   : > { %v2075_v7 = vsel %vm2072_vm10, %v2070_v52, %v2025_v19 }
 0x1bc   : > { %v2080_v18 = vsel %vm2077_vm11, %v2075_v7, %v2041_v46 }
 0x1bd   : > { %v1995_v13 = vpop.permute.xlu1 %1994  ;;  %2084 = vxpose.xlu1.b32.cont [3/4] (short) (narrow) %v2080_v18, 64 }
 0x1be   : > { %v2066_v61 = vsel %vm2062_vm8, %v2061_v23, %v1995_v13  ;;  %v2043_v39 = vpop.permute.xlu0 %2042 }
 0x1c1   : > { %v2011_v28 = vpop.permute.xlu1 %2010 }
 0x1c2   : > { %v2071_v63 = vsel %vm2067_vm9, %v2066_v61, %v2011_v28 }
 0x1c5   : > { %v2027_v54 = vpop.permute.xlu1 %2026 }
 0x1c6   : > { %v2076_v8 = vsel %vm2072_vm10, %v2071_v63, %v2027_v54 }
 0x1c7   : > { %v2081_v10 = vsel %vm2077_vm11, %v2076_v8, %v2043_v39 }
 0x1c8   : > { %2085 = vxpose.xlu1.b32.end [4/4] (short) (narrow) %v2081_v10, 64 }
 0x238   : > { %v2098_v11 = vpop.trf.xlu1 }
 0x239   : > { %2416 = vmatprep.mubr.msk.f32.mxu0 %vm2062_vm8, %v2098_v11 }
 0x23c   : > { %v2099_v49 = vpop.trf.xlu1 }
 0x23d   : > { %2417 = vmatmul.mubr.msk.f32.vlgmr.msra.gmra.mxu0 %vm2062_vm8, %v2099_v49 }
 0x240   : > { %v2100_v20 = vpop.trf.xlu1 }
 0x241   : > { %2419 = vmatprep.mubr.msk.f32.mxu0 %vm2062_vm8, %v2100_v20 }
 0x244   : > { %v2101_v12 = vpop.trf.xlu1 }
 0x245   : > { %2420 = vmatmul.mubr.msk.f32.gmra.mxu0 %vm2062_vm8, %v2101_v12 }
 0x248   : > { %v2102_v17 = vpop.trf.xlu1 }
 0x249   : > { %2422 = vmatprep.mubr.msk.f32.mxu1 %vm2062_vm8, %v2102_v17 }
 0x24c   : > { %v2103_v16 = vpop.trf.xlu1 }
 0x24d   : > { %2423 = vmatmul.mubr.msk.f32.vlgmr.msra.gmra.mxu1 %vm2062_vm8, %v2103_v16 }
 0x250   : > { %v2104_v38 = vpop.trf.xlu1 }
 0x251   : > { %2425 = vmatprep.mubr.msk.f32.mxu1 %vm2062_vm8, %v2104_v38 }
 0x254   : > { %v2105_v14 = vpop.trf.xlu1 }
 0x255   : > { %2426 = vmatmul.mubr.msk.f32.gmra.mxu1 %vm2062_vm8, %v2105_v14 }
 0x2fd   : > { %v2418_v5 = vpop.f32.mrf.mxu0 }
 0x2fe   : > { %v2244_v21 = vmax.f32 %v2418_v5, 0.0 }
 0x2ff   : > { %v2204_v22 = vpop.f32.mrf.mxu0 }
 0x300   : > { %v2243_v24 = vmax.f32 %v2204_v22, 0.0  ;;  %v2252_v32 = vmul.f32 %v2244_v21, %v2244_v21 }
 0x302   : > { %v2251_v26 = vmul.f32 %v2243_v24, %v2243_v24  ;;  %v2260_v37 = vsel %vm341_vm3, %v2252_v32, 0.0 }
 0x304   : > { %v2259_v36 = vsel %vm341_vm3, %v2251_v26, 0.0 }
 0x305   : > { %v2421_v4 = vpop.f32.mrf.mxu0  ;;  %v2261_v1 = vadd.f32 %v2260_v37, %v2259_v36 }
 0x306   : > { %v2246_v53 = vmax.f32 %v2421_v4, 0.0 }
 0x307   : > { %v2214_v44 = vpop.f32.mrf.mxu0 }
 0x308   : > { %v2245_v27 = vmax.f32 %v2214_v44, 0.0  ;;  %v2254_v6 = vmul.f32 %v2246_v53, %v2246_v53 }
 0x30a   : > { %v2253_v30 = vmul.f32 %v2245_v27, %v2245_v27  ;;  %v2264_v35 = vsel %vm341_vm3, %v2254_v6, 0.0 }
 0x30c   : > { %v2262_v58 = vsel %vm341_vm3, %v2253_v30, 0.0 }
 0x30d   : > { %v2424_v50 = vpop.f32.mrf.mxu1  ;;  %v2263_v55 = vadd.f32 %v2262_v58, %v2261_v1 }
 0x30e   : > { %v2248_v43 = vmax.f32 %v2424_v50, 0.0 }
 0x30f   : > { %v2224_v25 = vpop.f32.mrf.mxu1  ;;  %v2265_v57 = vadd.f32 %v2264_v35, %v2263_v55 }
 0x310   : > { %v2247_v15 = vmax.f32 %v2224_v25, 0.0  ;;  %v2256_v0 = vmul.f32 %v2248_v43, %v2248_v43 }
 0x312   : > { %v2255_v29 = vmul.f32 %v2247_v15, %v2247_v15  ;;  %v2268_v34 = vsel %vm341_vm3, %v2256_v0, 0.0 }
 0x314   : > { %v2266_v51 = vsel %vm341_vm3, %v2255_v29, 0.0 }
 0x315   : > { %v2427_v59 = vpop.f32.mrf.mxu1  ;;  %v2267_v9 = vadd.f32 %v2266_v51, %v2265_v57 }
 0x316   : > { %v2250_v3 = vmax.f32 %v2427_v59, 0.0 }
 0x317   : > { %v2234_v47 = vpop.f32.mrf.mxu1  ;;  %v2269_v31 = vadd.f32 %v2268_v34, %v2267_v9 }
 0x318   : > { %v2249_v2 = vmax.f32 %v2234_v47, 0.0  ;;  %v2258_v60 = vmul.f32 %v2250_v3, %v2250_v3 }
 0x31a   : > { %v2257_v19 = vmul.f32 %v2249_v2, %v2249_v2  ;;  %v2272_v45 = vsel %vm341_vm3, %v2258_v60, 0.0 }
 0x31c   : > { %v2270_v42 = vsel %vm341_vm3, %v2257_v19, 0.0 }
 0x31d   : > { %v2271_v41 = vadd.f32 %v2270_v42, %v2269_v31 }
 0x31f   : > { %v2273_v62 = vadd.f32 %v2272_v45, %v2271_v41 }
 0x321   : > { %v2274_v33 = vrot.slane %v2273_v62, 4 }
 0x323   : > { %v2275_v40 = vadd.f32 %v2274_v33, %v2273_v62 }
 0x325   : > { %v2276_v52 = vrot.slane %v2275_v40, 2 }
 0x327   : > { %v2277_v7 = vadd.f32 %v2276_v52, %v2275_v40 }
 0x329   : > { %v2278_v46 = vrot.slane %v2277_v7, 1 }
 0x32b   : > { %v2279_v18 = vadd.f32 %v2278_v46, %v2277_v7 }
 0x32d   : > { %v2280_v13 = vadd.f32 1e-06, %v2279_v18 }
 0x32f   : > { %2462 = vrsqrt.f32 %v2280_v13  ;;  %vm2283_vm12 = vcmp.eq.f32.partialorder %v2280_v13, inf  ;;  %v2286_v28 = vand.u32 2147483648, %v2280_v13  ;;  %vm2285_vm13 = vcmp.eq.f32.partialorder %v2280_v13, 0.0 }
 0x33c   : > { %v2463_v48 = vpop.eup %2462 }
 0x33d   : > { %v2282_v56 = vmul.f32 %v2463_v48, %v2280_v13 }
 0x33f   : > { %v2284_v23 = vsel %vm2283_vm12, %v2280_v13, %v2282_v56 }
 0x340   : > { %v2287_v61 = vsel %vm2285_vm13, %v2286_v28, %v2284_v23 }
 0x341   : > { %2464 = vrcp.f32 %v2287_v61 }
 0x34e   : > { %v2465_v63 = vpop.eup %2464 }
 0x34f   : > { %v2289_v54 = vmul.f32 %v2465_v63, %v2243_v24  ;;  %v2290_v39 = vmul.f32 %v2465_v63, %v2244_v21  ;;  %v2291_v8 = vmul.f32 %v2465_v63, %v2245_v27  ;;  %v2292_v10 = vmul.f32 %v2465_v63, %v2246_v53 }
 0x350   : > { %v2293_v11 = vmul.f32 %v2465_v63, %v2247_v15  ;;  %v2294_v49 = vmul.f32 %v2465_v63, %v2248_v43  ;;  %v2295_v20 = vmul.f32 %v2465_v63, %v2249_v2  ;;  %v2296_v12 = vmul.f32 %v2465_v63, %v2250_v3 }
 0x351   : > { %2297 = vst.msk [vmem:[%s163_s29] sm:$0xff] %vm341_vm3, %v2289_v54  ;;  %2298 = vst.msk [vmem:[%s163_s29 + $0x8] sm:$0xff] %vm341_vm3, %v2290_v39 }
 0x352   : > { %2299 = vst.msk [vmem:[%s163_s29 + $0x10] sm:$0xff] %vm341_vm3, %v2291_v8  ;;  %2300 = vst.msk [vmem:[%s163_s29 + $0x18] sm:$0xff] %vm341_vm3, %v2292_v10 }
 0x353   : > { %2301 = vst.msk [vmem:[%s163_s29 + $0x20] sm:$0xff] %vm341_vm3, %v2293_v11  ;;  %2302 = vst.msk [vmem:[%s163_s29 + $0x28] sm:$0xff] %vm341_vm3, %v2294_v49 }
 0x354   : > { %2303 = vst.msk [vmem:[%s163_s29 + $0x30] sm:$0xff] %vm341_vm3, %v2295_v20  ;;  %2304 = vst.msk [vmem:[%s163_s29 + $0x38] sm:$0xff] %vm341_vm3, %v2296_v12 }
 0x355 PF: > { %s12_s9 = sadd.s32 1, %s2472_s9  }
 0x356   : > { %p9_p4 = scmp.ge.s32.totalorder %s12_s9, 4  }
 0x358   :  { %11 = sbr.rel (!%p9_p4) target bundleno = 1 (0x1), region = 61 }

</bundles_post_ra>
